<compile_context>
chip_gen: v5e
topology: v5e:2x2
jax: 0.10.0
libtpu: 0.0.40
codegen_flags: <defaults>
</compile_context>

<pallas_src>
import functools
import math

import jax
import jax.numpy as jnp
from jax.experimental import pallas as pl
from jax.experimental.pallas import tpu as pltpu


def _round_up(x, m):
    return ((x + m - 1) // m) * m


# --------------------------------------------------------------------------
# Stage 1: row L2-normalization (+ cast to matmul dtype)
# --------------------------------------------------------------------------
def _row_normalize_kernel(x_ref, o_ref):
    x = x_ref[...].astype(jnp.float32)                       # [TR, D]
    ssq = jnp.sum(x * x, axis=-1, keepdims=True)             # [TR, 1]
    # F.normalize: x / max(||x||, eps), eps = 1e-12  ==  x * rsqrt(max(ssq, eps^2))
    inv = jax.lax.rsqrt(jnp.maximum(ssq, jnp.float32(1e-24)))  # EUP, not sqrt+div
    o_ref[...] = (x * inv).astype(o_ref.dtype)


def _row_normalize(x, out_dtype, *, block_rows=256):
    """L2-normalize rows of [R, D] and cast to out_dtype. R must be a multiple of 8."""
    R, D = x.shape
    tr = min(block_rows, R)
    assert R % tr == 0
    return pl.pallas_call(
        _row_normalize_kernel,
        out_shape=jax.ShapeDtypeStruct((R, D), out_dtype),
        grid=(R // tr,),
        in_specs=[pl.BlockSpec((tr, D), lambda i: (i, 0))],
        out_specs=pl.BlockSpec((tr, D), lambda i: (i, 0)),
        compiler_params=pltpu.CompilerParams(
            dimension_semantics=("parallel",),
        ),
    )(x)


# --------------------------------------------------------------------------
# Stage 2: similarity matmul + fused circle-margin / one-hot epilogue
# --------------------------------------------------------------------------
def _circle_logits_kernel(fn_ref, wn_ref, tgt_ref, out_ref, *, scale, margin,
                          block_c):
    # sim = f_n @ w_n.T via (1,1) contraction -- no transposed copy of w_n.
    sim = jax.lax.dot_general(
        fn_ref[...], wn_ref[...],
        dimension_numbers=(((1,), (1,)), ((), ())),
        preferred_element_type=jnp.float32)                  # [TM, TC] f32

    m = jnp.float32(margin)
    s = jnp.float32(scale)

    tm, tc = out_ref.shape
    col0 = pl.program_id(1) * block_c                        # global C offset of tile
    class_ids = col0 + jax.lax.broadcasted_iota(jnp.int32, (tm, tc), 1)
    is_target = class_ids == tgt_ref[...]                    # [TM,1] -> [TM,TC]

    # Fused epilogue: one relu/mul/sub chain instead of s_p, s_n and a blend.
    #   target:     s * relu(1 + m - sim) * (sim - (1 - m))
    #   non-target: s * relu(sim + m)     * (sim - m)
    # (detach() is a no-op for the forward pass.)
    alpha = jnp.maximum(jnp.where(is_target, (1.0 + m) - sim, sim + m), 0.0)
    delta = jnp.where(is_target, 1.0 - m, m)
    out_ref[...] = s * alpha * (sim - delta)


def circle_forward(features, weight, targets, *, scale, margin,
                   matmul_dtype=jnp.bfloat16,
                   block_n=256, block_c=512):
    """Circle head forward.

    features: [N, D] float, weight: [C, D] float, targets: [N] int.
    Returns [N, C] float32 logits.
    """
    N, D = features.shape
    C, D2 = weight.shape
    assert D == D2

    # Tile sizes: lane-dense C tiles (multiple of 128), sublane-friendly N tiles.
    tm = min(block_n, _round_up(N, 8))
    tc = min(block_c, _round_up(C, 128))
    n_pad = _round_up(N, tm)
    c_pad = _round_up(C, tc)

    f = features.astype(jnp.float32)
    w = weight.astype(jnp.float32)
    if n_pad != N:
        f = jnp.pad(f, ((0, n_pad - N), (0, 0)))
    if c_pad != C:
        w = jnp.pad(w, ((0, c_pad - C), (0, 0)))

    tgt = targets.astype(jnp.int32).reshape(N, 1)
    if n_pad != N:
        tgt = jnp.pad(tgt, ((0, n_pad - N), (0, 0)))

    # Normalize once (weight normalization is NOT redone per N-tile).
    f_n = _row_normalize(f, matmul_dtype, block_rows=tm)
    w_n = _row_normalize(w, matmul_dtype, block_rows=tc)

    kernel = functools.partial(_circle_logits_kernel,
                               scale=scale, margin=margin, block_c=tc)

    out = pl.pallas_call(
        kernel,
        out_shape=jax.ShapeDtypeStruct((n_pad, c_pad), jnp.float32),
        grid=(n_pad // tm, c_pad // tc),
        in_specs=[
            pl.BlockSpec((tm, D), lambda i, j: (i, 0)),      # features tile
            pl.BlockSpec((tc, D), lambda i, j: (j, 0)),      # weight tile
            pl.BlockSpec((tm, 1), lambda i, j: (i, 0)),      # targets tile
        ],
        out_specs=pl.BlockSpec((tm, tc), lambda i, j: (i, j)),
        compiler_params=pltpu.CompilerParams(
            dimension_semantics=("parallel", "parallel"),    # megacore on v7x
            vmem_limit_bytes=32 * 1024 * 1024,               # fits v7x 64 MiB VMEM
        ),
    )(f_n, w_n, tgt)

    return out[:N, :C]


# --------------------------------------------------------------------------
# Init + pure-JAX reference (for checking)
# --------------------------------------------------------------------------
def init_circle_weight(key, out_features, in_features):
    # torch kaiming_uniform_(a=sqrt(5)): bound = sqrt(1 / fan_in)
    bound = math.sqrt(1.0 / in_features)
    return jax.random.uniform(
        key, (out_features, in_features), dtype=jnp.float32,
        minval=-bound, maxval=bound)


def circle_reference(features, weight, targets, *, scale, margin):
    eps = 1e-12
    f_n = features / jnp.maximum(
        jnp.linalg.norm(features, axis=-1, keepdims=True), eps)
    w_n = weight / jnp.maximum(
        jnp.linalg.norm(weight, axis=-1, keepdims=True), eps)
    sim = f_n @ w_n.T
    alpha_p = jax.nn.relu(-sim + 1 + margin)
    alpha_n = jax.nn.relu(sim + margin)
    s_p = scale * alpha_p * (sim - (1 - margin))
    s_n = scale * alpha_n * (sim - margin)
    oh = jax.nn.one_hot(targets, weight.shape[0], dtype=jnp.float32)
    return oh * s_p + (1.0 - oh) * s_n


if __name__ == "__main__":
    # Small shapes consistent with the module: batch=8, in_feat=32, classes=16
    N, D, C = 8, 32, 16
    scale, margin = 64.0, 0.35

    key = jax.random.PRNGKey(0)
    k_feat, k_w, k_tgt = jax.random.split(key, 3)

    features = jax.random.normal(k_feat, (N, D), dtype=jnp.float32)
    weight = init_circle_weight(k_w, C, D)
    targets = jax.random.randint(k_tgt, (N,), 0, C)

    ref = circle_reference(features, weight, targets, scale=scale, margin=margin)

    # Exact-precision path (f32 matmul operands): tight check.
    out_f32 = circle_forward(features, weight, targets, scale=scale,
                             margin=margin, matmul_dtype=jnp.float32)
    out_f32 = jax.block_until_ready(out_f32)
    assert out_f32.shape == (N, C)
    assert jnp.allclose(out_f32, ref, atol=1e-3, rtol=1e-3)

    # Default fast path (bf16 matmul operands, f32 accumulate): loose check.
    out_bf16 = circle_forward(features, weight, targets, scale=scale,
                              margin=margin)
    out_bf16 = jax.block_until_ready(out_bf16)
    assert out_bf16.shape == (N, C)
    assert bool(jnp.all(jnp.isfinite(out_bf16)))
    assert jnp.allclose(out_bf16, ref, atol=1.0, rtol=2e-2)

    print("KERNEL_OK")
</pallas_src>

<mosaic_0001>
module attributes {stable_mosaic.version = 11 : i64} {
  func.func @_row_normalize_kernel(%arg0: i32, %arg1: memref<8x32xf32, #tpu.memory_space<vmem>>, %arg2: memref<8x32xf32, #tpu.memory_space<vmem>>) attributes {dimension_semantics = [#tpu.dimension_semantics<parallel>], iteration_bounds = array<i64: 1>, scalar_prefetch = 0 : i64, scratch_operands = 0 : i64, tpu.core_type = #tpu.core_type<tc>, window_params = [{transform_indices = @transform_0, window_bounds = array<i64: 8, 32>}, {transform_indices = @transform_1, window_bounds = array<i64: 8, 32>}]} {
    %c0 = arith.constant 0 : index
    %c0_0 = arith.constant 0 : index
    %0 = vector.load %arg1[%c0, %c0_0] : memref<8x32xf32, #tpu.memory_space<vmem>>, vector<8x32xf32>
    %1 = arith.mulf %0, %0 : vector<8x32xf32>
    %cst = arith.constant dense<0.000000e+00> : vector<8xf32>
    %2 = vector.multi_reduction <add>, %1, %cst [1] : vector<8x32xf32> to vector<8xf32>
    %3 = vector.shape_cast %2 : vector<8xf32> to vector<8x1xf32>
    %cst_1 = arith.constant 1.000000e-24 : f32
    %4 = vector.broadcast %cst_1 : f32 to vector<8x1xf32>
    %5 = arith.maximumf %3, %4 : vector<8x1xf32>
    %6 = math.rsqrt %5 : vector<8x1xf32>
    %7 = vector.broadcast %6 : vector<8x1xf32> to vector<8x32xf32>
    %8 = arith.mulf %0, %7 : vector<8x32xf32>
    %c0_2 = arith.constant 0 : index
    %c0_3 = arith.constant 0 : index
    %9 = vector.load %arg2[%c0_2, %c0_3] : memref<8x32xf32, #tpu.memory_space<vmem>>, vector<8x32xf32>
    tpu.vector_store %arg2[%c0_2, %c0_3], %8 {strides = array<i32>} : memref<8x32xf32, #tpu.memory_space<vmem>>, vector<8x32xf32>,
    return
  }
  func.func @transform_0(%arg0: i32) -> (i32, i32) {
    %c0_i32 = arith.constant 0 : i32
    %c0_i32_0 = arith.constant 0 : i32
    return %arg0, %c0_i32 : i32, i32
  }
  func.func @transform_1(%arg0: i32) -> (i32, i32) {
    %c0_i32 = arith.constant 0 : i32
    %c0_i32_0 = arith.constant 0 : i32
    return %arg0, %c0_i32 : i32, i32
  }
}

</mosaic_0001>

<bundles_post_ra>
// kernel: tpu_custom_call.1
= control target key start
LH: loop header
LB: loop body
LE: loop exit
PB: predicated region body
PF: predicated region fallthrough
CT: control target
= control target key end

     0   :  { %6 = vsyncpa [#allocation3], 0  ;;  %s135_s0 = inlined_call_operand.hbm [shape: f32[8,32], index: 0, kind: input, shape index: {}]   ;;  %s136_s1 = inlined_call_operand.hbm [shape: f32[8,32], index: 1, kind: output, shape index: {}]  }
   0x1   :  { %7 = vsyncpa [#allocation4], 0  ;;  %s13_s8 = sshll.u32 %s135_s0, 4  ;;  %s115_s9 = smov [#allocation2]   ;;  %s14_s8 = int_to_ptr.hbm [resolvable:$true] %s13_s8 }
   0x2   :  { %s15_s10 = sshll.u32 %s115_s9, 4  ;;  %s16_s10 = int_to_ptr.vmem [resolvable:$true] %s15_s10 }
   0x3   :  { %18 = dma.hbm_to_vmem [thread:$0]  %s14_s8, 128, %s16_s10, [#allocation3]  }
   0x4   :  { %111 = dma.done.wait [#allocation3], 128  }
   0x5   :  { %112 = vsyncadd [#allocation3], 4294967168  ;;  %v23_v0 = vld [vmem:[#allocation2] sm:$0xff]  ;;  %vm25_vm0 = vcmask 261120   ;;  %s116_s0 = smov [#allocation5]   ;;  %s49_s14 = sshll.u32 %s136_s1, 4  ;;  %s50_s14 = int_to_ptr.hbm [resolvable:$true] %s49_s14 }
   0x6   :  { %v24_v1 = vmul.f32 %v23_v0, %v23_v0  ;;  %s47_s11 = sshll.u32 %s116_s0, 4  ;;  %s48_s11 = int_to_ptr.vmem [resolvable:$true] %s47_s11 }
   0x8   :  { %v26_v2 = vsel %vm25_vm0, %v24_v1, 0.0 }
   0x9   :  { %27 = vadd.xlane.f32.xlu0 %v26_v2 }
  0x7c   :  { %v28_v3 = vpop.xlane.xlu0 %27 }
  0x7d   :  { %v29_v4 = vmax.f32 %v28_v3, 1e-24 }
  0x7f   :  { %61 = vrsqrt.f32 %v29_v4  ;;  %vm36_vm2 = vweird.f32 %v29_v4 }
  0x85   :  { %v62_v5 = vpop.eup %61 }
  0x86   :  { %v31_v6 = vmul.f32 %v62_v5, %v29_v4  ;;  %vm37_vm1 = vweird.f32 %v62_v5 }
  0x87   :  { %vm38_vm3 = vmor %vm36_vm2, %vm37_vm1 }
  0x88   :  { %v32_v7 = vmul.f32 %v62_v5, %v31_v6 }
  0x8a   :  { %v33_v8 = vmul.f32 0.5, %v32_v7 }
  0x8c   :  { %v34_v9 = vsub.f32 1.5, %v33_v8 }
  0x8e   :  { %v35_v10 = vmul.f32 %v62_v5, %v34_v9 }
  0x90   :  { %v39_v11 = vsel %vm38_vm3, %v62_v5, %v35_v10 }
  0x91   :  { %v40_v12 = vmul.f32 %v39_v11, %v23_v0 }
  0x93   :  { %41 = vst.msk [vmem:[#allocation5] sm:$0xff] %vm25_vm0, %v40_v12 }
  0x94   :  { %52 = dma.vmem_to_hbm [thread:$0]  %s48_s11, 128, %s50_s14, [#allocation4]  }
  0x95   :  { %113 = dma.done.wait [#allocation4], 128  }
  0x96   :  { %114 = vsyncadd [#allocation4], 4294967168 }
  0x97   :  { %57 = vsyncpa [#allocation3], 1 }
  0x98   :  { %58 = vsyncpa [#allocation4], 1 }

</bundles_post_ra>
